<compile_context>
chip_gen: v7x
topology: tpu7x:2x2x1
jax: 0.10.0
libtpu: 0.0.40
codegen_flags: <defaults>
</compile_context>

<pallas_src>
import jax
import jax.numpy as jnp
from jax import lax
from jax.experimental import pallas as pl
from jax.experimental.pallas import tpu as pltpu


def _value_mlp_kernel(x_ref, w1_ref, b1_ref, w2_ref, b2_ref, w3_ref, b3_ref,
                      o_ref):
    """relu(W1 @ x^T + b1) -> relu(W2 @ . + b2) -> w3 . + b3, batch on lanes."""
    # Native-layout (block_b, D) tile; cast to the matmul dtype in-kernel so
    # the wrapper never re-materializes x in HBM (f32 -> bf16 is VPU filler).
    x = x_ref[...].astype(w1_ref.dtype)

    # Layer 1: contract over D (axis 1 of BOTH operands) -> (H, block_b) f32.
    h1 = lax.dot_general(w1_ref[...], x, (((1,), (1,)), ((), ())),
                         preferred_element_type=jnp.float32)
    h1 = jnp.maximum(h1 + b1_ref[...], 0.0)                  # (H, block_b)

    # Layer 2: (H, H) @ (H, block_b) -> (H, block_b), f32 accumulation.
    h2 = jnp.dot(w2_ref[...], h1.astype(w2_ref.dtype),
                 preferred_element_type=jnp.float32)
    h2 = jnp.maximum(h2 + b2_ref[...], 0.0)                  # (H, block_b)

    # Layer 3 (H -> 1): broadcast multiply (VALU) + sublane reduce (XLU)
    # instead of an N=1 MXU pass; fold the scalar output bias (SMEM) before
    # the store so no separate XLA pass over the output is needed.
    out = jnp.sum(h2 * w3_ref[...], axis=0, keepdims=True)   # (1, block_b)
    o_ref[...] = (out + b3_ref[0]).astype(o_ref.dtype)


def _num_tensorcores():
    """Best-effort TensorCores-per-chip query (v7x=2, v5e/v6e=1)."""
    try:
        info = pltpu.get_tpu_info()
        for attr in ("num_tensorcores", "tensorcores_per_chip",
                     "num_cores", "cores_per_chip"):
            val = getattr(info, attr, None)
            if isinstance(val, int) and val > 0:
                return val
    except Exception:
        pass
    try:
        if "v7" in jax.devices()[0].device_kind.lower():
            return 2
    except Exception:
        pass
    return 1


def _pick_block_b(B, num_cores, cap=8192):
    """Largest 128-lane-aligned batch tile under a VMEM-derived cap.

    Single-TC chips (v5e/v6e): the biggest tile (per-step overhead dominates).
    Dual-TC v7x: at least two tiles and an even number of grid steps so the
    "parallel" batch axis shards evenly across both TensorCores.
    """
    n128 = pl.cdiv(B, 128)
    max_chunks = max(1, cap // 128)
    if num_cores >= 2 and n128 >= 2:
        tiles = max(2, pl.cdiv(n128, max_chunks))
        tiles += tiles % 2                      # even grid for 2 TCs
        chunks = pl.cdiv(n128, tiles)
    else:
        chunks = min(n128, max_chunks)
    block_b = chunks * 128
    if block_b >= B:
        return B        # one full-batch tile (block == array dims: always legal)
    return block_b


def value_network_forward(state, params, *, block_b=None,
                          compute_dtype=jnp.float32):
    """ValueNetwork forward pass via one fused Pallas TPU kernel.

    state:  (B, num_inputs) float32 (streamed in native layout)
    params: PyTorch-layout params: w1 (H, D), b1 (H,), w2 (H, H), b2 (H,),
            w3 (1, H), b3 (1,)
    compute_dtype: jnp.float32 or jnp.bfloat16 (matmul operand dtype only;
            accumulation, bias add and relu stay f32)
    returns: (B, 1) float32
    """
    B, D = state.shape
    H = params["w1"].shape[0]

    if block_b is None:
        block_b = _pick_block_b(B, _num_tensorcores())
    assert block_b == B or block_b % 128 == 0, (
        "block_b must be a multiple of 128 (lane-dense output) or the full batch")

    # cdiv grid: a non-divisible batch gets a masked tail block (no whole-batch
    # fallback, no wrapper-side padding pass).
    grid = (pl.cdiv(B, block_b),)

    # Resident weights are tiny: cast once in the wrapper. The streamed x stays
    # f32 in HBM and is cast inside the kernel if compute_dtype is narrower.
    w1 = params["w1"].astype(compute_dtype)                  # (H, D)
    w2 = params["w2"].astype(compute_dtype)                  # (H, H)
    b1 = params["b1"].reshape(H, 1).astype(jnp.float32)      # (H, 1)
    b2 = params["b2"].reshape(H, 1).astype(jnp.float32)      # (H, 1)
    w3 = params["w3"].reshape(H, 1).astype(jnp.float32)      # (H, 1) column
    b3 = params["b3"].reshape(1).astype(jnp.float32)         # (1,) SMEM scalar

    in_specs = [
        # x tile streams in native (B, D) layout; contiguous row DMA.
        # TODO(synk): if an xprof trace shows exposed DMA at step boundaries,
        # add pipeline_mode=pl.Buffered(3) to this spec only.
        pl.BlockSpec((block_b, D), lambda i: (i, 0)),
        pl.BlockSpec((H, D), lambda i: (0, 0)),        # W1 (resident)
        pl.BlockSpec((H, 1), lambda i: (0, 0)),        # b1 (resident)
        pl.BlockSpec((H, H), lambda i: (0, 0)),        # W2 (resident)
        pl.BlockSpec((H, 1), lambda i: (0, 0)),        # b2 (resident)
        pl.BlockSpec((H, 1), lambda i: (0, 0)),        # w3 column (resident)
        pl.BlockSpec(memory_space=pltpu.MemorySpace.SMEM),  # b3 scalar
    ]
    # Lane-dense output: one (1, block_b) row per grid step -> unmasked stores.
    out_specs = pl.BlockSpec((1, block_b), lambda i: (0, i))

    dtype_bytes = jnp.dtype(compute_dtype).itemsize
    weight_bytes = (H * D + H * H) * dtype_bytes + (3 * H + 1) * 4
    cost = pl.CostEstimate(
        flops=2 * B * (D * H + H * H + H),
        transcendentals=0,
        bytes_accessed=B * D * 4 + weight_bytes + B * 4,
    )

    out_row = pl.pallas_call(
        _value_mlp_kernel,
        out_shape=jax.ShapeDtypeStruct((1, B), jnp.float32),
        grid_spec=pltpu.PrefetchScalarGridSpec(
            num_scalar_prefetch=0,
            grid=grid,
            in_specs=in_specs,
            out_specs=out_specs,
        ),
        compiler_params=pltpu.CompilerParams(
            dimension_semantics=("parallel",),
            vmem_limit_bytes=32 * 1024 * 1024,
        ),
        cost_estimate=cost,
    )(state, w1, b1, w2, b2, w3, b3)

    # (1, B) lane-dense row -> (B, 1): pure layout plumbing, no compute.
    return out_row.reshape(B, 1)


def init_value_network_params(key, num_inputs, hidden_dim):
    """xavier_uniform weights (gain=1), zero biases — mirrors weights_init_.

    Weights are stored in PyTorch nn.Linear layout: (out_features, in_features).
    """
    k1, k2, k3 = jax.random.split(key, 3)

    def xavier(k, fan_out, fan_in):
        bound = jnp.sqrt(6.0 / (fan_in + fan_out))
        return jax.random.uniform(k, (fan_out, fan_in), jnp.float32,
                                  minval=-bound, maxval=bound)

    return {
        "w1": xavier(k1, hidden_dim, num_inputs),   # (H, D)
        "b1": jnp.zeros((hidden_dim,), jnp.float32),
        "w2": xavier(k2, hidden_dim, hidden_dim),   # (H, H)
        "b2": jnp.zeros((hidden_dim,), jnp.float32),
        "w3": xavier(k3, 1, hidden_dim),            # (1, H)
        "b3": jnp.zeros((1,), jnp.float32),
    }


def _reference_forward(state, p):
    with jax.default_matmul_precision("highest"):
        h1 = jax.nn.relu(state @ p["w1"].T + p["b1"])
        h2 = jax.nn.relu(h1 @ p["w2"].T + p["b2"])
        return h2 @ p["w3"].T + p["b3"]


if __name__ == "__main__":
    num_inputs, hidden_dim = 32, 64

    key = jax.random.PRNGKey(0)
    pkey, k1, k2, k3 = jax.random.split(key, 4)
    params = init_value_network_params(pkey, num_inputs, hidden_dim)

    # Case 1: tiny batch -> single resident whole-batch tile (grid=(1,)).
    x_small = jax.random.normal(k1, (8, num_inputs), jnp.float32)
    out_small = jax.block_until_ready(value_network_forward(x_small, params))
    assert out_small.shape == (8, 1), out_small.shape
    assert jnp.allclose(out_small, _reference_forward(x_small, params),
                        atol=1e-4, rtol=1e-4), "f32 small-batch mismatch"

    # Case 2: 128-lane-aligned streamed tiles, grid=(2,), native-layout x.
    x_big = jax.random.normal(k2, (256, num_inputs), jnp.float32)
    out_big = jax.block_until_ready(
        value_network_forward(x_big, params, block_b=128))
    assert out_big.shape == (256, 1), out_big.shape
    assert jnp.allclose(out_big, _reference_forward(x_big, params),
                        atol=1e-4, rtol=1e-4), "f32 tiled mismatch"

    # Case 3: batch not a multiple of the tile -> cdiv grid with masked tail.
    x_tail = jax.random.normal(k3, (200, num_inputs), jnp.float32)
    out_tail = jax.block_until_ready(
        value_network_forward(x_tail, params, block_b=128))
    assert out_tail.shape == (200, 1), out_tail.shape
    assert jnp.allclose(out_tail, _reference_forward(x_tail, params),
                        atol=1e-4, rtol=1e-4), "masked-tail mismatch"

    # Case 4: bf16 matmul operands (resident weights cast once in the wrapper,
    # streamed x cast in-kernel), f32 accumulation / bias / relu.
    out_bf16 = jax.block_until_ready(
        value_network_forward(x_big, params, block_b=128,
                              compute_dtype=jnp.bfloat16))
    assert jnp.allclose(out_bf16, _reference_forward(x_big, params),
                        atol=5e-2, rtol=5e-2), "bf16 mismatch"

    # Case 5: default chip-aware auto tiling (exercises _pick_block_b).
    out_auto = jax.block_until_ready(value_network_forward(x_big, params))
    assert jnp.allclose(out_auto, _reference_forward(x_big, params),
                        atol=1e-4, rtol=1e-4), "auto-tiled mismatch"

    print("KERNEL_OK")
</pallas_src>

<mosaic_0001>
module attributes {stable_mosaic.version = 11 : i64} {
  func.func @_value_mlp_kernel(%arg0: i32, %arg1: memref<8x32xf32, #tpu.memory_space<vmem>>, %arg2: memref<64x32xf32, #tpu.memory_space<vmem>>, %arg3: memref<64x1xf32, #tpu.memory_space<vmem>>, %arg4: memref<64x64xf32, #tpu.memory_space<vmem>>, %arg5: memref<64x1xf32, #tpu.memory_space<vmem>>, %arg6: memref<64x1xf32, #tpu.memory_space<vmem>>, %arg7: memref<1xf32, #tpu.memory_space<smem>>, %arg8: memref<1x8xf32, #tpu.memory_space<vmem>>) attributes {dimension_semantics = [#tpu.dimension_semantics<parallel>], iteration_bounds = array<i64: 1>, scalar_prefetch = 0 : i64, scratch_operands = 0 : i64, tpu.core_type = #tpu.core_type<tc>, window_params = [{transform_indices = @transform_0, window_bounds = array<i64: 8, 32>}, {pipeline_mode = #tpu.pipeline_mode<synchronous>, transform_indices = @transform_1, window_bounds = array<i64: 64, 32>}, {pipeline_mode = #tpu.pipeline_mode<synchronous>, transform_indices = @transform_2, window_bounds = array<i64: 64, 1>}, {pipeline_mode = #tpu.pipeline_mode<synchronous>, transform_indices = @transform_3, window_bounds = array<i64: 64, 64>}, {pipeline_mode = #tpu.pipeline_mode<synchronous>, transform_indices = @transform_4, window_bounds = array<i64: 64, 1>}, {pipeline_mode = #tpu.pipeline_mode<synchronous>, transform_indices = @transform_5, window_bounds = array<i64: 64, 1>}, {transform_indices = @transform_6, window_bounds = array<i64: 1>}, {transform_indices = @transform_7, window_bounds = array<i64: 1, 8>}]} {
    %c0 = arith.constant 0 : index
    %c0_0 = arith.constant 0 : index
    %0 = vector.load %arg1[%c0, %c0_0] : memref<8x32xf32, #tpu.memory_space<vmem>>, vector<8x32xf32>
    %c0_1 = arith.constant 0 : index
    %c0_2 = arith.constant 0 : index
    %1 = vector.load %arg2[%c0_1, %c0_2] : memref<64x32xf32, #tpu.memory_space<vmem>>, vector<64x32xf32>
    %cst = arith.constant dense<0.000000e+00> : vector<64x8xf32>
    %2 = tpu.matmul %1, %0, %cst {dimension_numbers = #tpu.dot_dimension_numbers<[1], [1], [0], [0], [0, 0, 1, 0], [], []>} : vector<64x32xf32>, vector<8x32xf32>, vector<64x8xf32> -> vector<64x8xf32>
    %c0_3 = arith.constant 0 : index
    %c0_4 = arith.constant 0 : index
    %3 = vector.load %arg3[%c0_3, %c0_4] : memref<64x1xf32, #tpu.memory_space<vmem>>, vector<64x1xf32>
    %4 = vector.broadcast %3 : vector<64x1xf32> to vector<64x8xf32>
    %5 = arith.addf %2, %4 : vector<64x8xf32>
    %cst_5 = arith.constant 0.000000e+00 : f32
    %6 = vector.broadcast %cst_5 : f32 to vector<64x8xf32>
    %7 = arith.maximumf %5, %6 : vector<64x8xf32>
    %c0_6 = arith.constant 0 : index
    %c0_7 = arith.constant 0 : index
    %8 = vector.load %arg4[%c0_6, %c0_7] : memref<64x64xf32, #tpu.memory_space<vmem>>, vector<64x64xf32>
    %cst_8 = arith.constant dense<0.000000e+00> : vector<64x8xf32>
    %9 = tpu.matmul %8, %7, %cst_8 {dimension_numbers = #tpu.dot_dimension_numbers<[1], [0], [0], [1], [0, 0, 1, 1], [], []>} : vector<64x64xf32>, vector<64x8xf32>, vector<64x8xf32> -> vector<64x8xf32>
    %c0_9 = arith.constant 0 : index
    %c0_10 = arith.constant 0 : index
    %10 = vector.load %arg5[%c0_9, %c0_10] : memref<64x1xf32, #tpu.memory_space<vmem>>, vector<64x1xf32>
    %11 = vector.broadcast %10 : vector<64x1xf32> to vector<64x8xf32>
    %12 = arith.addf %9, %11 : vector<64x8xf32>
    %cst_11 = arith.constant 0.000000e+00 : f32
    %13 = vector.broadcast %cst_11 : f32 to vector<64x8xf32>
    %14 = arith.maximumf %12, %13 : vector<64x8xf32>
    %c0_12 = arith.constant 0 : index
    %c0_13 = arith.constant 0 : index
    %15 = vector.load %arg6[%c0_12, %c0_13] : memref<64x1xf32, #tpu.memory_space<vmem>>, vector<64x1xf32>
    %16 = vector.broadcast %15 : vector<64x1xf32> to vector<64x8xf32>
    %17 = arith.mulf %14, %16 : vector<64x8xf32>
    %cst_14 = arith.constant dense<0.000000e+00> : vector<8xf32>
    %18 = vector.multi_reduction <add>, %17, %cst_14 [0] : vector<64x8xf32> to vector<8xf32>
    %19 = vector.shape_cast %18 : vector<8xf32> to vector<1x8xf32>
    %c0_15 = arith.constant 0 : index
    %20 = memref.load %arg7[%c0_15] : memref<1xf32, #tpu.memory_space<smem>>
    %21 = vector.broadcast %20 : f32 to vector<1x8xf32>
    %22 = arith.addf %19, %21 : vector<1x8xf32>
    %c0_16 = arith.constant 0 : index
    %c0_17 = arith.constant 0 : index
    %23 = vector.load %arg8[%c0_16, %c0_17] : memref<1x8xf32, #tpu.memory_space<vmem>>, vector<1x8xf32>
    tpu.vector_store %arg8[%c0_16, %c0_17], %22 {strides = array<i32>} : memref<1x8xf32, #tpu.memory_space<vmem>>, vector<1x8xf32>,
    return
  }
  func.func @transform_0(%arg0: i32) -> (i32, i32) {
    %c0_i32 = arith.constant 0 : i32
    %c0_i32_0 = arith.constant 0 : i32
    return %arg0, %c0_i32 : i32, i32
  }
  func.func @transform_1(%arg0: i32) -> (i32, i32) {
    %c0_i32 = arith.constant 0 : i32
    %c0_i32_0 = arith.constant 0 : i32
    %c0_i32_1 = arith.constant 0 : i32
    return %c0_i32, %c0_i32_0 : i32, i32
  }
  func.func @transform_2(%arg0: i32) -> (i32, i32) {
    %c0_i32 = arith.constant 0 : i32
    %c0_i32_0 = arith.constant 0 : i32
    %c0_i32_1 = arith.constant 0 : i32
    return %c0_i32, %c0_i32_0 : i32, i32
  }
  func.func @transform_3(%arg0: i32) -> (i32, i32) {
    %c0_i32 = arith.constant 0 : i32
    %c0_i32_0 = arith.constant 0 : i32
    %c0_i32_1 = arith.constant 0 : i32
    return %c0_i32, %c0_i32_0 : i32, i32
  }
  func.func @transform_4(%arg0: i32) -> (i32, i32) {
    %c0_i32 = arith.constant 0 : i32
    %c0_i32_0 = arith.constant 0 : i32
    %c0_i32_1 = arith.constant 0 : i32
    return %c0_i32, %c0_i32_0 : i32, i32
  }
  func.func @transform_5(%arg0: i32) -> (i32, i32) {
    %c0_i32 = arith.constant 0 : i32
    %c0_i32_0 = arith.constant 0 : i32
    %c0_i32_1 = arith.constant 0 : i32
    return %c0_i32, %c0_i32_0 : i32, i32
  }
  func.func @transform_6(%arg0: i32) -> i32 {
    %c0_i32 = arith.constant 0 : i32
    %c0_i32_0 = arith.constant 0 : i32
    return %c0_i32 : i32
  }
  func.func @transform_7(%arg0: i32) -> (i32, i32) {
    %c0_i32 = arith.constant 0 : i32
    %c0_i32_0 = arith.constant 0 : i32
    return %c0_i32, %arg0 : i32, i32
  }
}

</mosaic_0001>

<bundles_post_ra>
// kernel: tpu_custom_call.1
= control target key start
LH: loop header
LB: loop body
LE: loop exit
PB: predicated region body
PF: predicated region fallthrough
CT: control target
= control target key end

     0   :  { %vm85_vm0 = vcmask 261120   ;;  %v653_v3 = vmov 0   ;;  %s859_s0 = inlined_call_operand.vmem [shape: f32[8,32], index: 0, kind: input, shape index: {}]   ;;  %s860_s1 = inlined_call_operand.vmem [shape: f32[64,32], index: 1, kind: input, shape index: {}]   ;;  %s861_s2 = inlined_call_operand.vmem [shape: f32[64,1], index: 2, kind: input, shape index: {}]   ;;  %s862_s3 = inlined_call_operand.vmem [shape: f32[64,64], index: 3, kind: input, shape index: {}]   ;;  %s863_s4 = inlined_call_operand.vmem [shape: f32[64,1], index: 4, kind: input, shape index: {}]   ;;  %s864_s5 = inlined_call_operand.vmem [shape: f32[64,1], index: 5, kind: input, shape index: {}]   ;;  %s865_s6 = inlined_call_operand.<no memory space> [shape: f32[1], index: 6, kind: input, shape index: {}]   ;;  %s866_s7 = inlined_call_operand.hbm [shape: f32[1,8], index: 7, kind: output, shape index: {}]  }
   0x1   :  { %v28_v0 = vld [vmem:[%s859_s0] sm:$0xff]  ;;  %v30_v2 = vld [vmem:[%s860_s1 + $0x8] sm:$0xff]  ;;  %627 = vset.pattern.permute.xlu0 %v653_v3  ;;  %v31_v4 = vld [vmem:[%s860_s1 + $0x10] sm:$0xff]  ;;  %628 = vset.pattern.permute.xlu1 %v653_v3 }
   0x2   :  { %v29_v1 = vld [vmem:[%s860_s1] sm:$0xff]  ;;  %559 = vmatprep.subr.msk.mxu0 %vm85_vm0, %v28_v0  ;;  %v39_v6 = vld [vmem:[%s861_s2 + $0x10] sm:$0xff]  ;;  %v38_v7 = vld [vmem:[%s861_s2 + $0x8] sm:$0xff] }
   0x3   :  { %561 = vmatprep.mubr.msk.f32.mxu0 %vm85_vm0, %v29_v1  ;;  %560 = vmatpush3.xpose.msk.msra.mxu0 %vm85_vm0, %v28_v0  ;;  %v37_v5 = vld [vmem:[%s861_s2] sm:$0xff]  ;;  %v40_v8 = vld [vmem:[%s861_s2 + $0x18] sm:$0xff]  ;;  %v42_v12 = vld [vmem:[%s861_s2 + $0x28] sm:$0xff] }
   0x4   :  { %47 = vperm.xlu0 %627, %v37_v5   ;;  %57 = vperm.xlu1 %628, %v39_v6   ;;  %v32_v9 = vld [vmem:[%s860_s1 + $0x18] sm:$0xff]  ;;  %v33_v10 = vld [vmem:[%s860_s1 + $0x20] sm:$0xff]  ;;  %v34_v13 = vld [vmem:[%s860_s1 + $0x28] sm:$0xff] }
   0x5   :  { %v41_v11 = vld [vmem:[%s861_s2 + $0x20] sm:$0xff]  ;;  %v35_v14 = vld [vmem:[%s860_s1 + $0x30] sm:$0xff] }
   0x6   :  { %562 = vmatmul.mubr.msk.f32.vlgmr.msra.gmra.mrb[0].mxu0 %vm85_vm0, %v30_v2 }
   0x7   :  { %564 = vmatprep.mubr.msk.f32.mxu0 %vm85_vm0, %v31_v4 }
   0x8   :  { %52 = vperm.xlu0 %627, %v38_v7   ;;  %62 = vperm.xlu1 %628, %v40_v8  }
   0xa   :  { %565 = vmatmul.mubr.msk.f32.gmra.mrb[2].mxu0 %vm85_vm0, %v32_v9 }
   0xb   :  { %567 = vmatprep.mubr.msk.f32.mxu0 %vm85_vm0, %v33_v10 }
   0xc   :  { %13 = vsyncpa [#allocation4], 0  ;;  %67 = vperm.xlu0 %627, %v41_v11   ;;  %72 = vperm.xlu1 %628, %v42_v12   ;;  %v43_v15 = vld [vmem:[%s861_s2 + $0x30] sm:$0xff]  ;;  %v44_v16 = vld [vmem:[%s861_s2 + $0x38] sm:$0xff]  ;;  %vm282_vm1 = vcmask 523264   ;;  %vm476_vm2 = vcmask 64512  }
   0xd   :  { %v36_v17 = vld [vmem:[%s860_s1 + $0x38] sm:$0xff]  ;;  %v234_v18 = vld [vmem:[%s863_s4] sm:$0xff]  ;;  %v235_v19 = vld [vmem:[%s863_s4 + $0x8] sm:$0xff]  ;;  %s654_s29 = smov [#allocation3]   ;;  %vm501_vm3 = vcmask 57344  }
   0xe   :  { %568 = vmatmul.mubr.msk.f32.gmra.mrb[4].mxu0 %vm85_vm0, %v34_v13  ;;  %v236_v20 = vld [vmem:[%s863_s4 + $0x10] sm:$0xff]  ;;  %v237_v21 = vld [vmem:[%s863_s4 + $0x18] sm:$0xff]  ;;  %v420_v22 = vld [vmem:[%s864_s5] sm:$0xff]  ;;  %s509_s30 = sshll.u32 %s654_s29, 4  ;;  %s510_s30 = int_to_ptr.vmem [resolvable:$true] %s509_s30 }
   0xf   :  { %570 = vmatprep.mubr.msk.f32.mxu0 %vm85_vm0, %v35_v14  ;;  %v421_v23 = vld [vmem:[%s864_s5 + $0x8] sm:$0xff]  ;;  %v238_v24 = vld [vmem:[%s863_s4 + $0x20] sm:$0xff]  ;;  %v422_v25 = vld [vmem:[%s864_s5 + $0x10] sm:$0xff]  ;;  %s629_s8 = scalar_lea.vmem %s510_s30, 16  ;;  %s633_s0 = scalar_lea.vmem %s510_s30, 32 }
  0x10   :  { %77 = vperm.xlu0 %627, %v43_v15   ;;  %82 = vperm.xlu1 %628, %v44_v16   ;;  %v239_v26 = vld [vmem:[%s863_s4 + $0x28] sm:$0xff]  ;;  %v423_v27 = vld [vmem:[%s864_s5 + $0x18] sm:$0xff]  ;;  %v240_v28 = vld [vmem:[%s863_s4 + $0x30] sm:$0xff]  ;;  %p630_p0 = scmp.ne.s32.totalorder %s510_s30, %s629_s8  ;;  %p634_p1 = scmp.lt.s32.totalorder %s510_s30, %s510_s30 }
  0x11   :  { %v424_v29 = vld [vmem:[%s864_s5 + $0x20] sm:$0xff]  ;;  %v241_v30 = vld [vmem:[%s863_s4 + $0x38] sm:$0xff]  ;;  %v425_v31 = vld [vmem:[%s864_s5 + $0x28] sm:$0xff]  ;;  %p635_p2 = scmp.lt.s32.totalorder %s633_s0, %s629_s8 }
  0x12   :  { %571 = vmatmul.mubr.msk.f32.gmra.mrb[6].mxu0 %vm85_vm0, %v36_v17  ;;  %v426_v32 = vld [vmem:[%s864_s5 + $0x30] sm:$0xff]  ;;  %v427_v33 = vld [vmem:[%s864_s5 + $0x38] sm:$0xff]  ;;  %v226_v34 = vld [vmem:[%s862_s3] sm:$0xff] }
  0x13   :  { %v228_v35 = vld [vmem:[%s862_s3 + $0x10] sm:$0xff]  ;;  %589 = vmatprep.mubr.msk.f32.mxu0 %vm282_vm1, %v226_v34  ;;  %v227_v8 = vld [vmem:[%s862_s3 + $0x8] sm:$0xff]  ;;  %v229_v9 = vld [vmem:[%s862_s3 + $0x18] sm:$0xff]  ;;  %p636_p3 = por %p635_p2, %p634_p1 }
  0x14   :  { %244 = vperm.xlu0 %627, %v234_v18   ;;  %249 = vperm.xlu1 %628, %v235_v19   ;;  %v230_v10 = vld [vmem:[%s862_s3 + $0x20] sm:$0xff]  ;;  %v231_v11 = vld [vmem:[%s862_s3 + $0x28] sm:$0xff]  ;;  %v232_v12 = vld [vmem:[%s862_s3 + $0x30] sm:$0xff] }
  0x15   :  { %592 = vmatprep.mubr.msk.f32.mxu1 %vm282_vm1, %v228_v35  ;;  %v233_v13 = vld [vmem:[%s862_s3 + $0x38] sm:$0xff]  ;;  %p637_p4 = pnand %p636_p3, %p630_p0 }
  0x18   :  { %254 = vperm.xlu0 %627, %v236_v20   ;;  %259 = vperm.xlu1 %628, %v237_v21  }
  0x1c   :  { %430 = vperm.xlu0 %627, %v420_v22   ;;  %435 = vperm.xlu1 %628, %v421_v23  }
  0x20   :  { %264 = vperm.xlu0 %627, %v238_v24   ;;  %440 = vperm.xlu1 %628, %v422_v25  }
  0x24   :  { %269 = vperm.xlu0 %627, %v239_v26   ;;  %445 = vperm.xlu1 %628, %v423_v27  }
  0x28   :  { %274 = vperm.xlu0 %627, %v240_v28   ;;  %450 = vperm.xlu1 %628, %v424_v29  }
  0x2c   :  { %279 = vperm.xlu0 %627, %v241_v30   ;;  %455 = vperm.xlu1 %628, %v425_v31  }
  0x30   :  { %460 = vperm.xlu0 %627, %v426_v32   ;;  %465 = vperm.xlu1 %628, %v427_v33  }
  0x83   :  { %v48_v36 = vpop.permute.xlu0 %47  ;;  %v58_v37 = vpop.permute.xlu1 %57 }
  0x87   :  { %v53_v38 = vpop.permute.xlu0 %52  ;;  %v63_v39 = vpop.permute.xlu1 %62 }
  0x8b   :  { %v73_v49 = vpop.permute.xlu1 %72  ;;  %v68_v52 = vpop.permute.xlu0 %67 }
  0x8f   :  { %v83_v61 = vpop.permute.xlu1 %82  ;;  %v78_v0 = vpop.permute.xlu0 %77 }
  0x93   :  { %v245_v14 = vpop.permute.xlu0 %244  ;;  %v250_v15 = vpop.permute.xlu1 %249 }
  0x97   :  { %v255_v16 = vpop.permute.xlu0 %254  ;;  %v260_v17 = vpop.permute.xlu1 %259 }
  0x9b   :  { %v431_v18 = vpop.permute.xlu0 %430  ;;  %v436_v19 = vpop.permute.xlu1 %435 }
  0x9f   :  { %v265_v20 = vpop.permute.xlu0 %264  ;;  %v441_v21 = vpop.permute.xlu1 %440 }
  0xa3   :  { %v270_v22 = vpop.permute.xlu0 %269  ;;  %v446_v23 = vpop.permute.xlu1 %445 }
  0xa7   :  { %v275_v24 = vpop.permute.xlu0 %274  ;;  %v451_v33 = vpop.permute.xlu1 %450 }
  0xd9   :  { %v563_v40 = vpop.f32.mrb[0].mxu0 }
  0xda   :  { %v185_v41 = vadd.f32 %v563_v40, %v53_v38  ;;  %v179_v42 = vpop.f32.mrb[1].mxu0 }
  0xdb   :  { %v180_v43 = vadd.f32 %v179_v42, %v48_v36 }
  0xdc   :  { %v219_v44 = vmax.f32 %v185_v41, 0.0 }
  0xdd   :  { %v218_v45 = vmax.f32 %v180_v43, 0.0  ;;  %v566_v46 = vpop.f32.mrb[2].mxu0 }
  0xde   :  { %v195_v47 = vadd.f32 %v566_v46, %v63_v39  ;;  %v189_v48 = vpop.f32.mrb[3].mxu0 }
  0xdf   :  { %v601_v50 = vpack.c.bf16 %v219_v44, %v218_v45  ;;  %v190_v51 = vadd.f32 %v189_v48, %v58_v37  ;;  %v280_v45 = vpop.permute.xlu0 %279 }
  0xe0   :  { %v221_v53 = vmax.f32 %v195_v47, 0.0 }
  0xe1   :  { %v220_v54 = vmax.f32 %v190_v51, 0.0  ;;  %v569_v55 = vpop.f32.mrb[4].mxu0  ;;  %602 = vmatprep.subr.bf16.mxu0 %v601_v50  ;;  %617 = vmatprep.subr.bf16.mxu1 %v601_v50 }
  0xe2   :  { %v205_v56 = vadd.f32 %v569_v55, %v73_v49  ;;  %v199_v57 = vpop.f32.mrb[5].mxu0  ;;  %604 = vmatpush3.bf16.msra.mxu0 %v601_v50  ;;  %621 = vmatpush3.bf16.msra.mxu1 %v601_v50 }
  0xe3   :  { %v605_v58 = vpack.c.bf16 %v221_v53, %v220_v54  ;;  %v200_v59 = vadd.f32 %v199_v57, %v68_v52  ;;  %v456_v52 = vpop.permute.xlu1 %455 }
  0xe4   :  { %v223_v60 = vmax.f32 %v205_v56, 0.0 }
  0xe5   :  { %v222_v62 = vmax.f32 %v200_v59, 0.0  ;;  %v572_v63 = vpop.f32.mrb[6].mxu0  ;;  %606 = vmatprep.subr.bf16.mxu0 %v605_v58  ;;  %618 = vmatprep.subr.bf16.mxu1 %v605_v58 }
  0xe6   :  { %v215_v1 = vadd.f32 %v572_v63, %v83_v61  ;;  %v209_v2 = vpop.f32.mrb[7].mxu0  ;;  %608 = vmatpush3.bf16.msra.mxu0 %v605_v58  ;;  %622 = vmatpush3.bf16.msra.mxu1 %v605_v58 }
  0xe7   :  { %v609_v3 = vpack.c.bf16 %v223_v60, %v222_v62  ;;  %v210_v4 = vadd.f32 %v209_v2, %v78_v0  ;;  %v461_v0 = vpop.permute.xlu0 %460 }
  0xe8   :  { %v225_v5 = vmax.f32 %v215_v1, 0.0 }
  0xe9   :  { %v224_v6 = vmax.f32 %v210_v4, 0.0  ;;  %610 = vmatprep.subr.bf16.mxu0 %v609_v3  ;;  %619 = vmatprep.subr.bf16.mxu1 %v609_v3  ;;  %v466_v4 = vpop.permute.xlu1 %465 }
  0xea   :  { %612 = vmatpush3.bf16.msra.mxu0 %v609_v3  ;;  %623 = vmatpush3.bf16.msra.mxu1 %v609_v3 }
  0xeb   :  { %v613_v7 = vpack.c.bf16 %v225_v5, %v224_v6 }
  0xed   :  { %614 = vmatprep.subr.bf16.mxu0 %v613_v7  ;;  %620 = vmatprep.subr.bf16.mxu1 %v613_v7 }
  0xee   :  { %616 = vmatpush3.bf16.msra.mxu0 %v613_v7  ;;  %624 = vmatpush3.bf16.msra.mxu1 %v613_v7 }
  0xf1   :  { %590 = vmatmul.mubr.msk.f32.vlgmr.msra.gmra.mrb[8].mxu0 %vm282_vm1, %v227_v8  ;;  %593 = vmatmul.mubr.msk.f32.vlgmr.msra.gmra.mrb[0].mxu1 %vm282_vm1, %v229_v9 }
  0xf2   :  { %595 = vmatprep.mubr.msk.f32.mxu1 %vm282_vm1, %v230_v10 }
  0xf5   :  { %596 = vmatmul.mubr.msk.f32.gmra.mrb[2].mxu1 %vm282_vm1, %v231_v11 }
  0xf6   :  { %598 = vmatprep.mubr.msk.f32.mxu1 %vm282_vm1, %v232_v12 }
  0xf9   :  { %599 = vmatmul.mubr.msk.f32.gmra.mrb[4].mxu1 %vm282_vm1, %v233_v13 }
 0x1c4   :  { %v591_v25 = vpop.f32.mrb[8].mxu0  ;;  %v594_v26 = vpop.f32.mrb[0].mxu1 }
 0x1c5   :  { %v379_v27 = vadd.f32 %v591_v25, %v250_v15  ;;  %v389_v28 = vadd.f32 %v594_v26, %v260_v17  ;;  %v373_v29 = vpop.f32.mrb[9].mxu0  ;;  %v383_v30 = vpop.f32.mrb[1].mxu1 }
 0x1c6   :  { %v374_v31 = vadd.f32 %v373_v29, %v245_v14  ;;  %v384_v32 = vadd.f32 %v383_v30, %v255_v16 }
 0x1c7   :  { %v413_v34 = vmax.f32 %v379_v27, 0.0  ;;  %v415_v35 = vmax.f32 %v389_v28, 0.0 }
 0x1c8   :  { %v412_v36 = vmax.f32 %v374_v31, 0.0  ;;  %v414_v37 = vmax.f32 %v384_v32, 0.0  ;;  %v597_v38 = vpop.f32.mrb[2].mxu1 }
 0x1c9   :  { %v469_v39 = vmul.f32 %v436_v19, %v413_v34  ;;  %v399_v40 = vadd.f32 %v597_v38, %v270_v22  ;;  %v393_v41 = vpop.f32.mrb[3].mxu1  ;;  %v471_v47 = vmul.f32 %v446_v23, %v415_v35 }
 0x1ca   :  { %v468_v42 = vmul.f32 %v431_v18, %v412_v36  ;;  %v470_v43 = vmul.f32 %v441_v21, %v414_v37  ;;  %v394_v44 = vadd.f32 %v393_v41, %v265_v20  ;;  %v499_v18 = vstv %s865_s6 }
 0x1cb   :  { %v478_v46 = vsel %vm476_vm2, %v469_v39, 0.0  ;;  %v417_v49 = vmax.f32 %v399_v40, 0.0  ;;  %v482_v60 = vsel %vm476_vm2, %v471_v47, 0.0 }
 0x1cc   :  { %v477_v48 = vsel %vm476_vm2, %v468_v42, 0.0  ;;  %v416_v50 = vmax.f32 %v394_v44, 0.0  ;;  %v600_v51 = vpop.f32.mrb[4].mxu1  ;;  %v480_v56 = vsel %vm476_vm2, %v470_v43, 0.0 }
 0x1cd   :  { %v479_v53 = vadd.f32 %v478_v46, %v477_v48  ;;  %v409_v54 = vadd.f32 %v600_v51, %v280_v45  ;;  %v403_v55 = vpop.f32.mrb[5].mxu1  ;;  %v473_v61 = vmul.f32 %v456_v52, %v417_v49 }
 0x1ce   :  { %v472_v57 = vmul.f32 %v451_v33, %v416_v50  ;;  %v404_v58 = vadd.f32 %v403_v55, %v275_v24 }
 0x1cf   :  { %v481_v59 = vadd.f32 %v480_v56, %v479_v53  ;;  %v419_v62 = vmax.f32 %v409_v54, 0.0  ;;  %v486_v6 = vsel %vm476_vm2, %v473_v61, 0.0 }
 0x1d0   :  { %v418_v63 = vmax.f32 %v404_v58, 0.0  ;;  %v484_v2 = vsel %vm476_vm2, %v472_v57, 0.0 }
 0x1d1   :  { %v483_v1 = vadd.f32 %v482_v60, %v481_v59  ;;  %v475_v7 = vmul.f32 %v466_v4, %v419_v62 }
 0x1d2   :  { %v474_v3 = vmul.f32 %v461_v0, %v418_v63 }
 0x1d3   :  { %v485_v5 = vadd.f32 %v484_v2, %v483_v1  ;;  %v490_v11 = vsel %vm476_vm2, %v475_v7, 0.0 }
 0x1d4   :  { %v488_v9 = vsel %vm476_vm2, %v474_v3, 0.0 }
 0x1d5   :  { %v487_v8 = vadd.f32 %v486_v6, %v485_v5 }
 0x1d7   :  { %v489_v10 = vadd.f32 %v488_v9, %v487_v8 }
 0x1d9   :  { %v491_v12 = vadd.f32 %v490_v11, %v489_v10 }
 0x1db   :  { %v492_v13 = vrot.slane %v491_v12, 4 }
 0x1dd   :  { %v493_v14 = vadd.f32 %v492_v13, %v491_v12 }
 0x1df   :  { %v494_v15 = vrot.slane %v493_v14, 2 }
 0x1e1   :  { %v495_v16 = vadd.f32 %v494_v15, %v493_v14 }
 0x1e3   :  { %v496_v17 = vrot.slane %v495_v16, 1 }
 0x1e5   :  { %v497_v19 = vadd.f32 %v496_v17, %v495_v16 }
 0x1e7   :  { %v500_v20 = vadd.f32 %v499_v18, %v497_v19 }
 0x1e9   :  { %502 = vst.msk [vmem:[#allocation3] sm:$0x1] %vm501_vm3, %v500_v20 }
 0x1ea   :  { %640 = shalt.err (!%p637_p4)
}
 0x1eb   :  { %s641_s11 = scalar_lea.hbm %s866_s7, 16 }
 0x1ec   :  { %p642_p5 = scmp.ne.s32.totalorder %s866_s7, %s641_s11  ;;  %p645_p6 = scmp.lt.u32.totalorder %s641_s11, %s866_s7 }
 0x1ee   :  { %p647_p7 = pnand %p645_p6, %p642_p5 }
 0x1f0   :  { %650 = shalt.err (!%p647_p7)
}
 0x1f1   :  { %512 = dma.vmem_to_hbm [thread:$0]  %s510_s30, 16, %s866_s7, [#allocation4]  }
 0x1f2   :  { %651 = dma.done.wait [#allocation4], 16  }
 0x1f3   :  { %652 = vsyncadd [#allocation4], 4294967280 }
 0x1f4   :  { %516 = vsyncpa [#allocation4], 1 }

</bundles_post_ra>
